<compile_context>
chip_gen: v6e
topology: v6e:2x2x1
jax: 0.10.0
libtpu: 0.0.40
codegen_flags: <defaults>
</compile_context>

<pallas_src>
import math

import jax
import jax.numpy as jnp
from jax.experimental import pallas as pl
from jax.experimental.pallas import tpu as pltpu


def _offset_scale_kernel(x_ref, gamma_ref, beta_ref, *out_refs):
    # x_ref:     (tn, Dp)  lane-dense tile of the packed input
    # gamma_ref: (H, Dp)   per-head scale, lane-packed (full array resident)
    # beta_ref:  (H, Dp)   per-head offset, lane-packed
    # out_refs:  H refs, each (tn, Dp)
    x = x_ref[...]
    g = gamma_ref[...]
    b = beta_ref[...]
    for h, o_ref in enumerate(out_refs):   # H is small & static -> unrolled
        o_ref[...] = (x * g[h, :] + b[h, :]).astype(o_ref.dtype)


def offset_scale(x, gamma, beta, *, tn=2048):
    """Pallas implementation of OffsetScale.forward.

    x: (..., D), gamma/beta: (H, D). Returns a tuple of H arrays, each (..., D).
    tn = row tile in *packed* rows (each packed row carries p = lcm(D,128)//D
    original rows when D is not already a multiple of 128).
    """
    *lead, D = x.shape
    H, Dg = gamma.shape
    assert Dg == D
    N = math.prod(lead) if lead else 1

    itemsize = jnp.dtype(x.dtype).itemsize
    sub = max(8, 32 // itemsize)            # sublane multiple: f32 8, bf16 16, i8 32

    # Lane-dense packing: fold p rows into the lane axis so last dim % 128 == 0.
    if D % 128 == 0:
        p = 1
    else:
        Dp_cand = math.lcm(D, 128)
        p = Dp_cand // D if Dp_cand <= 2048 else 1   # keep packed rows reasonable
    Dp = p * D

    # Reshape to packed rows; only pad when N is not a multiple of p (<= p-1 rows).
    xf = x.reshape(N, D)
    pad_rows = (-N) % p
    if pad_rows:
        xf = jnp.pad(xf, ((0, pad_rows), (0, 0)))
    Nfold = N + pad_rows
    Np_raw = Nfold // p
    xp = xf.reshape(Np_raw, Dp)

    gamma_p = jnp.tile(gamma, (1, p)) if p > 1 else gamma   # (H, Dp)
    beta_p = jnp.tile(beta, (1, p)) if p > 1 else beta

    # Tile selection: cap the double-buffered per-step footprint at ~12 MiB so it
    # fits v5e's 16 MiB default scoped VMEM and v7x's smaller physical VMEM.
    bytes_per_packed_row = (1 + H) * 2 * Dp * itemsize
    tn_cap = max(sub, (12 * 1024 * 1024 // bytes_per_packed_row) // sub * sub)
    tn_eff = max(sub, (min(tn, tn_cap) // sub) * sub)

    if Np_raw <= tn_eff:
        if Np_raw >= 2 * sub:
            # Split into >= 2 grid steps so "parallel" shards across v7x's 2 TCs.
            half = (Np_raw + 1) // 2
            tn_eff = ((half + sub - 1) // sub) * sub
        else:
            tn_eff = Np_raw                 # single full-extent block (tiny input)
    num_blocks = pl.cdiv(Np_raw, tn_eff)    # ragged last block handled by Pallas

    cost = pl.CostEstimate(
        flops=2 * H * N * D,
        transcendentals=0,
        bytes_accessed=(N * D + 2 * H * D + H * N * D) * itemsize,
    )

    outs = pl.pallas_call(
        _offset_scale_kernel,
        out_shape=tuple(
            jax.ShapeDtypeStruct((Np_raw, Dp), x.dtype) for _ in range(H)
        ),
        grid=(num_blocks,),
        in_specs=[
            pl.BlockSpec((tn_eff, Dp), lambda i: (i, 0)),   # x tile (read once)
            pl.BlockSpec((H, Dp), lambda i: (0, 0)),        # full gamma, resident
            pl.BlockSpec((H, Dp), lambda i: (0, 0)),        # full beta, resident
        ],
        out_specs=tuple(
            pl.BlockSpec((tn_eff, Dp), lambda i: (i, 0)) for _ in range(H)
        ),
        compiler_params=pltpu.CompilerParams(
            dimension_semantics=("parallel",),
            vmem_limit_bytes=32 * 1024 * 1024,
        ),
        cost_estimate=cost,
    )(xp, gamma_p, beta_p)

    def _unpack(o):
        o = o.reshape(Nfold, D)
        if pad_rows:
            o = o[:N]                       # only copies when N % p != 0
        return o.reshape(*lead, D) if lead else o.reshape(D)

    return tuple(_unpack(o) for o in outs)


if __name__ == "__main__":
    # Module config (small, consistent with the forward): dim=32, heads=2.
    DIM = 32
    HEADS = 2
    B, S = 2, 8  # x: (B, S, DIM)

    key = jax.random.PRNGKey(0)
    k_x, k_g = jax.random.split(key)

    # Deterministic parameter init mirroring __init__:
    #   gamma ~ Normal(0, 0.02), beta = 0
    gamma = 0.02 * jax.random.normal(k_g, (HEADS, DIM), dtype=jnp.float32)
    beta = jnp.zeros((HEADS, DIM), dtype=jnp.float32)

    x = jax.random.normal(k_x, (B, S, DIM), dtype=jnp.float32)

    outs = jax.block_until_ready(offset_scale(x, gamma, beta))

    # Reference check (plain JAX): einsum('... d, h d -> ... h d') + beta, unbind(-2)
    ref = x[..., None, :] * gamma + beta
    for h in range(HEADS):
        assert outs[h].shape == (B, S, DIM)
        assert jnp.allclose(outs[h], ref[..., h, :], atol=1e-6, rtol=1e-6)

    # Extra coverage: (a) N % p != 0 (tail-pad path), (b) ragged last grid block.
    k2, k3 = jax.random.split(k_x)
    x2 = jax.random.normal(k2, (3, 7, DIM), dtype=jnp.float32)    # N=21, p=4
    x3 = jax.random.normal(k3, (1, 300, DIM), dtype=jnp.float32)  # 2 blocks, ragged
    for xt in (x2, x3):
        outs_t = jax.block_until_ready(offset_scale(xt, gamma, beta))
        ref_t = xt[..., None, :] * gamma + beta
        for h in range(HEADS):
            assert outs_t[h].shape == xt.shape
            assert jnp.allclose(outs_t[h], ref_t[..., h, :], atol=1e-6, rtol=1e-6)

    print("KERNEL_OK")
</pallas_src>

<mosaic_0001>
module attributes {stable_mosaic.version = 11 : i64} {
  func.func @_offset_scale_kernel(%arg0: i32, %arg1: memref<4x128xf32, #tpu.memory_space<vmem>>, %arg2: memref<2x128xf32, #tpu.memory_space<vmem>>, %arg3: memref<2x128xf32, #tpu.memory_space<vmem>>, %arg4: memref<4x128xf32, #tpu.memory_space<vmem>>, %arg5: memref<4x128xf32, #tpu.memory_space<vmem>>) attributes {dimension_semantics = [#tpu.dimension_semantics<parallel>], iteration_bounds = array<i64: 1>, scalar_prefetch = 0 : i64, scratch_operands = 0 : i64, tpu.core_type = #tpu.core_type<tc>, window_params = [{transform_indices = @transform_0, window_bounds = array<i64: 4, 128>}, {pipeline_mode = #tpu.pipeline_mode<synchronous>, transform_indices = @transform_1, window_bounds = array<i64: 2, 128>}, {pipeline_mode = #tpu.pipeline_mode<synchronous>, transform_indices = @transform_2, window_bounds = array<i64: 2, 128>}, {transform_indices = @transform_3, window_bounds = array<i64: 4, 128>}, {transform_indices = @transform_4, window_bounds = array<i64: 4, 128>}]} {
    %c0 = arith.constant 0 : index
    %c0_0 = arith.constant 0 : index
    %0 = vector.load %arg1[%c0, %c0_0] : memref<4x128xf32, #tpu.memory_space<vmem>>, vector<4x128xf32>
    %c0_1 = arith.constant 0 : index
    %c0_2 = arith.constant 0 : index
    %1 = vector.load %arg2[%c0_1, %c0_2] : memref<2x128xf32, #tpu.memory_space<vmem>>, vector<2x128xf32>
    %c0_3 = arith.constant 0 : index
    %c0_4 = arith.constant 0 : index
    %2 = vector.load %arg3[%c0_3, %c0_4] : memref<2x128xf32, #tpu.memory_space<vmem>>, vector<2x128xf32>
    %3 = vector.extract_strided_slice %1 {offsets = [0, 0], sizes = [1, 128], strides = [1, 1]} : vector<2x128xf32> to vector<1x128xf32>
    %4 = vector.shape_cast %3 : vector<1x128xf32> to vector<128xf32>
    %5 = vector.shape_cast %4 : vector<128xf32> to vector<1x128xf32>
    %6 = vector.broadcast %5 : vector<1x128xf32> to vector<4x128xf32>
    %7 = arith.mulf %0, %6 : vector<4x128xf32>
    %8 = vector.extract_strided_slice %2 {offsets = [0, 0], sizes = [1, 128], strides = [1, 1]} : vector<2x128xf32> to vector<1x128xf32>
    %9 = vector.shape_cast %8 : vector<1x128xf32> to vector<128xf32>
    %10 = vector.shape_cast %9 : vector<128xf32> to vector<1x128xf32>
    %11 = vector.broadcast %10 : vector<1x128xf32> to vector<4x128xf32>
    %12 = arith.addf %7, %11 : vector<4x128xf32>
    %c0_5 = arith.constant 0 : index
    %c0_6 = arith.constant 0 : index
    %13 = vector.load %arg4[%c0_5, %c0_6] : memref<4x128xf32, #tpu.memory_space<vmem>>, vector<4x128xf32>
    tpu.vector_store %arg4[%c0_5, %c0_6], %12 {strides = array<i32>} : memref<4x128xf32, #tpu.memory_space<vmem>>, vector<4x128xf32>,
    %14 = vector.extract_strided_slice %1 {offsets = [1, 0], sizes = [1, 128], strides = [1, 1]} : vector<2x128xf32> to vector<1x128xf32>
    %15 = vector.shape_cast %14 : vector<1x128xf32> to vector<128xf32>
    %16 = vector.shape_cast %15 : vector<128xf32> to vector<1x128xf32>
    %17 = vector.broadcast %16 : vector<1x128xf32> to vector<4x128xf32>
    %18 = arith.mulf %0, %17 : vector<4x128xf32>
    %19 = vector.extract_strided_slice %2 {offsets = [1, 0], sizes = [1, 128], strides = [1, 1]} : vector<2x128xf32> to vector<1x128xf32>
    %20 = vector.shape_cast %19 : vector<1x128xf32> to vector<128xf32>
    %21 = vector.shape_cast %20 : vector<128xf32> to vector<1x128xf32>
    %22 = vector.broadcast %21 : vector<1x128xf32> to vector<4x128xf32>
    %23 = arith.addf %18, %22 : vector<4x128xf32>
    %c0_7 = arith.constant 0 : index
    %c0_8 = arith.constant 0 : index
    %24 = vector.load %arg5[%c0_7, %c0_8] : memref<4x128xf32, #tpu.memory_space<vmem>>, vector<4x128xf32>
    tpu.vector_store %arg5[%c0_7, %c0_8], %23 {strides = array<i32>} : memref<4x128xf32, #tpu.memory_space<vmem>>, vector<4x128xf32>,
    return
  }
  func.func @transform_0(%arg0: i32) -> (i32, i32) {
    %c0_i32 = arith.constant 0 : i32
    %c0_i32_0 = arith.constant 0 : i32
    return %arg0, %c0_i32 : i32, i32
  }
  func.func @transform_1(%arg0: i32) -> (i32, i32) {
    %c0_i32 = arith.constant 0 : i32
    %c0_i32_0 = arith.constant 0 : i32
    %c0_i32_1 = arith.constant 0 : i32
    return %c0_i32, %c0_i32_0 : i32, i32
  }
  func.func @transform_2(%arg0: i32) -> (i32, i32) {
    %c0_i32 = arith.constant 0 : i32
    %c0_i32_0 = arith.constant 0 : i32
    %c0_i32_1 = arith.constant 0 : i32
    return %c0_i32, %c0_i32_0 : i32, i32
  }
  func.func @transform_3(%arg0: i32) -> (i32, i32) {
    %c0_i32 = arith.constant 0 : i32
    %c0_i32_0 = arith.constant 0 : i32
    return %arg0, %c0_i32 : i32, i32
  }
  func.func @transform_4(%arg0: i32) -> (i32, i32) {
    %c0_i32 = arith.constant 0 : i32
    %c0_i32_0 = arith.constant 0 : i32
    return %arg0, %c0_i32 : i32, i32
  }
}

</mosaic_0001>

<bundles_post_ra>
// kernel: tpu_custom_call.1
= control target key start
LH: loop header
LB: loop body
LE: loop exit
PB: predicated region body
PF: predicated region fallthrough
CT: control target
= control target key end

     0   :  { %10 = vsyncpa [#allocation3], 0  ;;  %s233_s0 = inlined_call_operand.hbm [shape: f32[4,128], index: 0, kind: input, shape index: {}]   ;;  %s234_s1 = inlined_call_operand.hbm [shape: f32[2,128], index: 1, kind: input, shape index: {}]   ;;  %s235_s2 = inlined_call_operand.vmem [shape: f32[2,128], index: 2, kind: input, shape index: {}]   ;;  %s236_s3 = inlined_call_operand.hbm [shape: f32[4,128], index: 3, kind: output, shape index: {0}]   ;;  %s237_s4 = inlined_call_operand.hbm [shape: f32[4,128], index: 4, kind: output, shape index: {1}]  }
   0x1   :  { %11 = vsyncpa [#allocation6], 0 }
   0x2   :  { %12 = vsyncpa [#allocation4], 0 }
   0x3   :  { %13 = vsyncpa [#allocation9], 0  ;;  %s189_s15 = smov [#allocation2]   ;;  %s190_s17 = smov [#allocation5]  }
   0x4   :  { %s20_s16 = sshll.u32 %s189_s15, 4  ;;  %s30_s18 = sshll.u32 %s190_s17, 4  ;;  %s21_s16 = int_to_ptr.vmem [resolvable:$true] %s20_s16  ;;  %s31_s18 = int_to_ptr.vmem [resolvable:$true] %s30_s18 }
   0x5   :  { %s109_s19 = scalar_lea.vmem %s21_s16, 64  ;;  %p114_p1 = scmp.lt.s32.totalorder %s21_s16, %s21_s16 }
   0x6   :  { %p110_p0 = scmp.ne.s32.totalorder %s21_s16, %s109_s19  ;;  %p115_p2 = scmp.lt.s32.totalorder %s109_s19, %s109_s19 }
   0x8   :  { %p116_p3 = por %p115_p2, %p114_p1 }
   0xa   :  { %p117_p4 = pnand %p116_p3, %p110_p0 }
   0xc   :  { %120 = shalt.err (!%p117_p4)
}
   0xd   :  { %23 = dma.hbm_to_vmem [thread:$0]  %s233_s0, 64, %s21_s16, [#allocation3]  }
   0xe   :  { %s129_s22 = scalar_lea.vmem %s31_s18, 32  ;;  %p134_p6 = scmp.lt.s32.totalorder %s31_s18, %s31_s18 }
   0xf   :  { %p130_p5 = scmp.ne.s32.totalorder %s31_s18, %s129_s22  ;;  %p135_p7 = scmp.lt.s32.totalorder %s129_s22, %s129_s22 }
  0x11   :  { %p136_p8 = por %p135_p7, %p134_p6 }
  0x13   :  { %p137_p9 = pnand %p136_p8, %p130_p5 }
  0x15   :  { %140 = shalt.err (!%p137_p9)
}
  0x16   :  { %33 = dma.hbm_to_vmem [thread:$0]  %s234_s1, 32, %s31_s18, [#allocation6]  }
  0x17   :  { %181 = dma.done.wait [#allocation3], 64  }
  0x18   :  { %182 = vsyncadd [#allocation3], 4294967232 }
  0x19   :  { %183 = dma.done.wait [#allocation6], 32  }
  0x1a   :  { %184 = vsyncadd [#allocation6], 4294967264  ;;  %v45_v0 = vlaneseq  ;;  %v42_v4 = vld [vmem:[#allocation2] sm:$0xf]  ;;  %v43_v5 = vld [vmem:[#allocation5] sm:$0x3] }
  0x1b   :  { %v44_v6 = vld [vmem:[%s235_s2] sm:$0x3]  ;;  %s191_s26 = smov [#allocation7]   ;;  %s192_s27 = smov [#allocation8]  }
  0x1c   :  { %v46_v1 = vshrl.u32 %v45_v0, 7  ;;  %s73_s1 = sshll.u32 %s191_s26, 4  ;;  %s83_s28 = sshll.u32 %s192_s27, 4  ;;  %s74_s1 = int_to_ptr.vmem [resolvable:$true] %s73_s1  ;;  %s84_s28 = int_to_ptr.vmem [resolvable:$true] %s83_s28 }
  0x1d   :  { %s141_s29 = scalar_lea.vmem %s74_s1, 64  ;;  %p146_p11 = scmp.lt.s32.totalorder %s74_s1, %s74_s1 }
  0x1e   :  { %v47_v2 = vsub.s32 0, %v46_v1  ;;  %v58_v3 = vsub.s32 1, %v46_v1  ;;  %p142_p10 = scmp.ne.s32.totalorder %s74_s1, %s141_s29  ;;  %p147_p12 = scmp.lt.s32.totalorder %s141_s29, %s141_s29 }
  0x20   :  { %v48_v7 = vrot.slane %v43_v5, %v47_v2  ;;  %v53_v8 = vrot.slane %v44_v6, %v47_v2  ;;  %v59_v9 = vrot.slane %v43_v5, %v58_v3  ;;  %v64_v10 = vrot.slane %v44_v6, %v58_v3  ;;  %p148_p13 = por %p147_p12, %p146_p11 }
  0x22   :  { %v49_v11 = vmul.f32 %v48_v7, %v42_v4  ;;  %v60_v12 = vmul.f32 %v59_v9, %v42_v4  ;;  %p149_p0 = pnand %p148_p13, %p142_p10 }
  0x24   :  { %v54_v13 = vadd.f32 %v53_v8, %v49_v11  ;;  %v65_v14 = vadd.f32 %v64_v10, %v60_v12 }
  0x26   :  { %55 = vst [vmem:[#allocation7] sm:$0xf] %v54_v13  ;;  %66 = vst [vmem:[#allocation8] sm:$0xf] %v65_v14 }
  0x27   :  { %152 = shalt.err (!%p149_p0)
}
  0x28   :  { %76 = dma.vmem_to_hbm [thread:$0]  %s74_s1, 64, %s236_s3, [#allocation4]  }
  0x29   :  { %s161_s5 = scalar_lea.vmem %s84_s28, 64  ;;  %p166_p2 = scmp.lt.s32.totalorder %s84_s28, %s84_s28 }
  0x2a   :  { %p162_p1 = scmp.ne.s32.totalorder %s84_s28, %s161_s5  ;;  %p167_p3 = scmp.lt.s32.totalorder %s161_s5, %s161_s5 }
  0x2c   :  { %p168_p4 = por %p167_p3, %p166_p2 }
  0x2e   :  { %p169_p5 = pnand %p168_p4, %p162_p1 }
  0x30   :  { %172 = shalt.err (!%p169_p5)
}
  0x31   :  { %86 = dma.vmem_to_hbm [thread:$0]  %s84_s28, 64, %s237_s4, [#allocation9]  }
  0x32   :  { %185 = dma.done.wait [#allocation4], 64  }
  0x33   :  { %186 = vsyncadd [#allocation4], 4294967232 }
  0x34   :  { %187 = dma.done.wait [#allocation9], 64  }
  0x35   :  { %188 = vsyncadd [#allocation9], 4294967232 }
  0x36   :  { %93 = vsyncpa [#allocation3], 1 }
  0x37   :  { %94 = vsyncpa [#allocation6], 1 }
  0x38   :  { %95 = vsyncpa [#allocation4], 1 }
  0x39   :  { %96 = vsyncpa [#allocation9], 1 }

</bundles_post_ra>
